<compile_context>
chip_gen: v7x
topology: tpu7x:2x2x1
jax: 0.10.0
libtpu: 0.0.40
codegen_flags: <defaults>
</compile_context>

<pallas_src>
import jax
import jax.numpy as jnp
from jax.experimental import pallas as pl
from jax.experimental.pallas import tpu as pltpu


def _mlp_proj_kernel(x_ref, w_ref, b_ref, o_ref):
    """One (batch, token-tile) grid step.

    x_ref : (C, TN)      activation tile, channel-major (as stored in HBM)
    w_ref : (C, E_pad)   full projection weight, resident in VMEM
    b_ref : (1, E_pad)   bias (f32), resident in VMEM
    o_ref : (TN, E_pad)  output tile (token-major, lane-dense E_pad)
    """
    # Contract over the channel axis (dim 0 of both operands):
    #   out[n, e] = sum_c x[c, n] * w[c, e]
    # Transposed-LHS matmul pattern (same dimension numbers as the flash
    # attention backward dV computation); folds the NCHW->NHWC transpose into
    # the MXU instead of materializing it in HBM.  For tiny C the MXU is
    # under-utilized, but the kernel is HBM-bandwidth bound anyway.
    acc = jax.lax.dot_general(
        x_ref[...], w_ref[...],
        dimension_numbers=(((0,), (0,)), ((), ())),
        preferred_element_type=jnp.float32,
    )
    o_ref[...] = (acc + b_ref[...]).astype(o_ref.dtype)


def _select_token_tile(HW, B, C, E_pad, in_itemsize, out_itemsize,
                       desired_tn, vmem_budget_bytes):
    """Pick the token tile: as large as possible (amortize ~0.35us/grid-step
    overhead) while fitting the VMEM budget (v7x: 64 MiB physical / 32 MiB
    scoped default), and keep >= 2 grid blocks so the parallel axes can be
    sharded across v7x's two TensorCores."""
    tn = min(desired_tn, HW)
    if tn < HW:
        tn = max(128, (tn // 128) * 128)
    if B == 1 and HW >= 2 * 128 and tn >= HW:
        # single-batch input: split the spatial axis so the grid has >= 2 blocks
        tn = max(128, ((HW // 2) // 128) * 128)

    def vmem_need(t):
        return (2 * t * C * in_itemsize          # double-buffered x tiles
                + 2 * t * E_pad * out_itemsize   # double-buffered out tiles
                + C * E_pad * in_itemsize        # resident weight
                + E_pad * 4)                     # resident bias (f32)

    while tn > 128 and vmem_need(tn) > vmem_budget_bytes:
        tn -= 128
    return tn


def mlp_forward(x_nchw, weight, bias, *, desired_tn=1024,
                compute_dtype=jnp.bfloat16,
                vmem_limit_bytes=32 * 1024 * 1024):
    """SegFormer decoder MLP:  x.flatten(2).transpose(1, 2) @ W^T + b.

    x_nchw : (B, C, H, W)
    weight : (embed_dim, input_dim)   (PyTorch nn.Linear convention)
    bias   : (embed_dim,)
    returns: (B, H*W, embed_dim) in x's dtype.
    """
    B, C, H, W = x_nchw.shape
    E, K = weight.shape
    assert K == C, f"weight in_features {K} != channels {C}"
    HW = H * W
    out_dtype = x_nchw.dtype

    # (B, C, H, W) -> (B, C, H*W): free reshape, no HBM transpose / pad copy.
    x = x_nchw.reshape(B, C, HW)
    if compute_dtype is not None and x.dtype != compute_dtype:
        # In a real model the producer already emits bf16 activations, making
        # this cast a no-op; bf16 halves HBM bytes for the token stream and
        # feeds the MXU at its native bf16 rate on all three generations.
        x = x.astype(compute_dtype)
    w = weight.T
    if compute_dtype is not None and w.dtype != compute_dtype:
        w = w.astype(compute_dtype)

    # Lane-dense output: pad embed dim up to a multiple of 128 so output
    # stores are full-width vst's (no masked vst.msk).  Sliced back below.
    E_pad = pl.cdiv(E, 128) * 128
    b = bias.astype(jnp.float32).reshape(1, E)
    if E_pad != E:
        w = jnp.pad(w, ((0, 0), (0, E_pad - E)))
        b = jnp.pad(b, ((0, 0), (0, E_pad - E)))

    in_itemsize = jnp.dtype(x.dtype).itemsize
    out_itemsize = jnp.dtype(out_dtype).itemsize
    tn = _select_token_tile(HW, B, C, E_pad, in_itemsize, out_itemsize,
                            desired_tn, vmem_budget_bytes=20 * 1024 * 1024)

    grid = (B, pl.cdiv(HW, tn))

    out = pl.pallas_call(
        _mlp_proj_kernel,
        out_shape=jax.ShapeDtypeStruct((B, HW, E_pad), out_dtype),
        grid=grid,
        in_specs=[
            # (C, tn) activation tile; batch dim squeezed out of the kernel ref.
            pl.BlockSpec((None, C, tn), lambda bi, ni: (bi, 0, ni)),
            # Weight / bias never change across the grid: keep them fully
            # resident in VMEM (no double-buffering, no per-step DMA).
            pl.BlockSpec(memory_space=pltpu.MemorySpace.VMEM),
            pl.BlockSpec(memory_space=pltpu.MemorySpace.VMEM),
        ],
        out_specs=pl.BlockSpec((None, tn, E_pad), lambda bi, ni: (bi, ni, 0)),
        compiler_params=pltpu.CompilerParams(
            dimension_semantics=("parallel", "parallel"),
            vmem_limit_bytes=vmem_limit_bytes,
        ),
    )(x, w, b)

    if E_pad != E:
        out = out[:, :, :E]
    return out


if __name__ == "__main__":
    key = jax.random.PRNGKey(0)
    B, C, H, W = 2, 4, 16, 16       # input_dim = C = 4
    embed_dim = 32

    k1, k2, k3 = jax.random.split(key, 3)
    x = jax.random.normal(k1, (B, C, H, W), dtype=jnp.float32)
    # deterministic synthetic nn.Linear params (PyTorch shape conventions)
    weight = jax.random.normal(k2, (embed_dim, C), dtype=jnp.float32) * 0.1
    bias = jax.random.normal(k3, (embed_dim,), dtype=jnp.float32) * 0.1

    y = jax.block_until_ready(jax.jit(mlp_forward)(x, weight, bias))
    assert y.shape == (B, H * W, embed_dim)

    # Tight check: reference with the same bf16 operand quantization
    # (validates the kernel's math / indexing exactly).
    xq = x.astype(jnp.bfloat16).astype(jnp.float32)
    wq = weight.astype(jnp.bfloat16).astype(jnp.float32)
    tokens_q = jnp.transpose(xq.reshape(B, C, H * W), (0, 2, 1))
    y_tight = jnp.einsum("bnc,ec->bne", tokens_q, wq,
                         precision=jax.lax.Precision.HIGHEST) + bias
    assert jnp.allclose(y, y_tight, atol=1e-3, rtol=1e-3)

    # Loose check: full-f32 PyTorch-equivalent reference (module semantics
    # preserved to within bf16 operand precision).
    tokens_f32 = jnp.transpose(x.reshape(B, C, H * W), (0, 2, 1))
    y_f32 = tokens_f32 @ weight.T + bias
    assert jnp.allclose(y, y_f32, atol=5e-2, rtol=5e-2)

    print("KERNEL_OK")
</pallas_src>

<mosaic_0001>
module attributes {stable_mosaic.version = 11 : i64} {
  func.func @_mlp_proj_kernel(%arg0: i32, %arg1: i32, %arg2: memref<1x4x256xbf16, #tpu.memory_space<vmem>>, %arg3: memref<4x128xbf16, #tpu.memory_space<vmem>>, %arg4: memref<1x128xf32, #tpu.memory_space<vmem>>, %arg5: memref<1x256x128xf32, #tpu.memory_space<vmem>>) attributes {dimension_semantics = [#tpu.dimension_semantics<parallel>, #tpu.dimension_semantics<parallel>], iteration_bounds = array<i64: 2, 1>, scalar_prefetch = 0 : i64, scratch_operands = 0 : i64, tpu.core_type = #tpu.core_type<tc>, window_params = [{transform_indices = @transform_0, window_bounds = array<i64: 1, 4, 256>}, {pipeline_mode = #tpu.pipeline_mode<synchronous>, transform_indices = @transform_1, window_bounds = array<i64: 4, 128>}, {pipeline_mode = #tpu.pipeline_mode<synchronous>, transform_indices = @transform_2, window_bounds = array<i64: 1, 128>}, {transform_indices = @transform_3, window_bounds = array<i64: 1, 256, 128>}]} {
    %c0 = arith.constant 0 : index
    %c0_0 = arith.constant 0 : index
    %c0_1 = arith.constant 0 : index
    %0 = vector.load %arg2[%c0, %c0_0, %c0_1] : memref<1x4x256xbf16, #tpu.memory_space<vmem>>, vector<1x4x256xbf16>
    %1 = vector.shape_cast %0 : vector<1x4x256xbf16> to vector<4x256xbf16>
    %c0_2 = arith.constant 0 : index
    %c0_3 = arith.constant 0 : index
    %2 = vector.load %arg3[%c0_2, %c0_3] : memref<4x128xbf16, #tpu.memory_space<vmem>>, vector<4x128xbf16>
    %cst = arith.constant dense<0.000000e+00> : vector<256x128xf32>
    %3 = tpu.matmul %1, %2, %cst {dimension_numbers = #tpu.dot_dimension_numbers<[0], [0], [1], [1], [0, 1, 1, 1], [], []>} : vector<4x256xbf16>, vector<4x128xbf16>, vector<256x128xf32> -> vector<256x128xf32>
    %c0_4 = arith.constant 0 : index
    %c0_5 = arith.constant 0 : index
    %4 = vector.load %arg4[%c0_4, %c0_5] : memref<1x128xf32, #tpu.memory_space<vmem>>, vector<1x128xf32>
    %5 = vector.broadcast %4 : vector<1x128xf32> to vector<256x128xf32>
    %6 = arith.addf %3, %5 : vector<256x128xf32>
    %c0_6 = arith.constant 0 : index
    %c0_7 = arith.constant 0 : index
    %c0_8 = arith.constant 0 : index
    %7 = vector.load %arg5[%c0_6, %c0_7, %c0_8] : memref<1x256x128xf32, #tpu.memory_space<vmem>>, vector<1x256x128xf32>
    %8 = vector.shape_cast %7 : vector<1x256x128xf32> to vector<256x128xf32>
    %9 = vector.shape_cast %6 : vector<256x128xf32> to vector<1x256x128xf32>
    tpu.vector_store %arg5[%c0_6, %c0_7, %c0_8], %9 {strides = array<i32>} : memref<1x256x128xf32, #tpu.memory_space<vmem>>, vector<1x256x128xf32>,
    return
  }
  func.func @transform_0(%arg0: i32, %arg1: i32) -> (i32, i32, i32) {
    %c0_i32 = arith.constant 0 : i32
    %c0_i32_0 = arith.constant 0 : i32
    return %arg0, %c0_i32, %arg1 : i32, i32, i32
  }
  func.func @transform_1(%arg0: i32, %arg1: i32) -> (i32, i32) {
    %c0_i32 = arith.constant 0 : i32
    %c0_i32_0 = arith.constant 0 : i32
    %c0_i32_1 = arith.constant 0 : i32
    return %c0_i32, %c0_i32_0 : i32, i32
  }
  func.func @transform_2(%arg0: i32, %arg1: i32) -> (i32, i32) {
    %c0_i32 = arith.constant 0 : i32
    %c0_i32_0 = arith.constant 0 : i32
    %c0_i32_1 = arith.constant 0 : i32
    return %c0_i32, %c0_i32_0 : i32, i32
  }
  func.func @transform_3(%arg0: i32, %arg1: i32) -> (i32, i32, i32) {
    %c0_i32 = arith.constant 0 : i32
    %c0_i32_0 = arith.constant 0 : i32
    return %arg0, %arg1, %c0_i32 : i32, i32, i32
  }
}

</mosaic_0001>

<bundles_post_ra>
// kernel: mlp_forward.1
= control target key start
LH: loop header
LB: loop body
LE: loop exit
PB: predicated region body
PF: predicated region fallthrough
CT: control target
= control target key end

     0   :  { %s751_s12 = smov 0   ;;  %s753_s13 = smov 0   ;;  %s878_s0 = inlined_call_operand.vmem [shape: bf16[2,4,256], index: 0, kind: input, shape index: {}]   ;;  %s879_s1 = inlined_call_operand.vmem [shape: bf16[4,128], index: 1, kind: input, shape index: {}]   ;;  %s880_s2 = inlined_call_operand.vmem [shape: f32[1,128], index: 2, kind: input, shape index: {}]   ;;  %s881_s3 = inlined_call_operand.vmem [shape: f32[2,256,128], index: 3, kind: output, shape index: {}]  }
   0x1   :  { %s755_s14 = smov 0  }
   0x2 LB: > { %s25_s15 = sadd.s32 1, %s725_s13  ;;  %p600_p0 = scmp.ge.s32.totalorder %s729_s14, 1  ;;  %s729_s14 = sphi %s755_s14, %s13_s14   ;;  %s725_s13 = sphi %s753_s13, %s883_s13   ;;  %s721_s12 = sphi %s751_s12, %s882_s12  }
   0x3   : > { %p27_p1 = scmp.ge.s32.totalorder %s25_s15, 2  ;;  %p158_p2 = scmp.lt.s32.totalorder %s729_s14, 3 }
   0x5   : > { %s885_s15 = smov (%p27_p1, %s25_s15), 0  ;;  %p159_p3 = pnand %p600_p0, %p158_p2 }
   0x6   : > { %p191_p4 = scmp.lt.s32.totalorder (!%p159_p3), %s721_s12, 1  ;;  %v212_v0 = vld [vmem:[%s879_s1] sm:$0x3] (!%p159_p3)  ;;  %vm312_vm0 = vcmask (!%p159_p3), 1041408   ;;  %vm263_vm1 = vcmask (!%p159_p3), 31744  }
   0x7   : > { %162 = sbr.rel (%p159_p3) target bundleno = 399 (0x18f), region = 32  ;;  %680 = vmatprep.subr.msk.bf16.mxu0 (!%p159_p3), %vm312_vm0, %v212_v0  ;;  %v314_v1 = vsel (!%p159_p3), %vm312_vm0, %v212_v0, 0  ;;  %681 = vmatprep.subr.msk.bf16.mxu1 (!%p159_p3), %vm312_vm0, %v212_v0  ;;  %v798_v20 = vld [vmem:[%s880_s2] ss:$0 sm:$0xff] (!%p159_p3) }
   0x8   : > { %645 = vmatpush3.bf16.msra.mxu0 (!%p159_p3), %v314_v1  ;;  %679 = vmatpush3.bf16.msra.mxu1 (!%p159_p3), %v314_v1 }
   0xe   : > { %s887_s12 = smov (!%p191_p4, %s721_s12), 1 }
   0xf   : > { %s625_s18 = sshll.u32 %s887_s12, 2  ;;  %s626_s22 = sshll.u32 %s887_s12, 8 }
  0x10   : > { %s198_s21 = scalar_lea.vmem %s878_s0, %s625_s18  ;;  %s803_s27 = scalar_lea.vmem %s881_s3, %s626_s22 }
  0x11   : > { %v606_v2 = vld.sshfl [vmem:[%s198_s21] sm:$0x33 pattern:$0x76325410] }
  0x12   : > { %231 = vxpose.xlu0.c.b16.start.end [1/1] (short) %v606_v2, 128  ;;  %v228_v3 = vcombine.high %v606_v2, %v606_v2 }
  0x2f   : > { %247 = vxpose.xlu0.c.b16.start.end [1/1] (short) %v228_v3, 128 }
  0x78   : > { %v239_v4 = vpop.trf.xlu0 }
  0x79   : > { %646 = vmatprep.mubr.msk.bf16.mxu0 %vm263_vm1, %v239_v4 }
  0x7c   : > { %v240_v5 = vpop.trf.xlu0 }
  0x7d   : > { %647 = vmatmul.mubr.msk.bf16.vlgmr.msra.gmra.mrb[0].mxu0 %vm263_vm1, %v240_v5 }
  0x80   : > { %v241_v6 = vpop.trf.xlu0 }
  0x81   : > { %650 = vmatprep.mubr.msk.bf16.mxu0 %vm263_vm1, %v241_v6 }
  0x84   : > { %v242_v7 = vpop.trf.xlu0 }
  0x85   : > { %651 = vmatmul.mubr.msk.bf16.gmra.mrb[4].mxu0 %vm263_vm1, %v242_v7 }
  0x88   : > { %v243_v8 = vpop.trf.xlu0 }
  0x89   : > { %654 = vmatprep.mubr.msk.bf16.mxu0 %vm263_vm1, %v243_v8 }
  0x8c   : > { %v244_v9 = vpop.trf.xlu0 }
  0x8d   : > { %655 = vmatmul.mubr.msk.bf16.gmra.mrb[8].mxu0 %vm263_vm1, %v244_v9 }
  0x90   : > { %v245_v10 = vpop.trf.xlu0 }
  0x91   : > { %658 = vmatprep.mubr.msk.bf16.mxu0 %vm263_vm1, %v245_v10 }
  0x94   : > { %v246_v11 = vpop.trf.xlu0 }
  0x95   : > { %659 = vmatmul.mubr.msk.bf16.gmra.mrb[12].mxu0 %vm263_vm1, %v246_v11 }
  0x98   : > { %v255_v12 = vpop.trf.xlu0 }
  0x99   : > { %662 = vmatprep.mubr.msk.bf16.mxu1 %vm263_vm1, %v255_v12 }
  0x9c   : > { %v256_v13 = vpop.trf.xlu0 }
  0x9d   : > { %663 = vmatmul.mubr.msk.bf16.vlgmr.msra.gmra.mrb[0].mxu1 %vm263_vm1, %v256_v13 }
  0xa0   : > { %v257_v14 = vpop.trf.xlu0 }
  0xa1   : > { %666 = vmatprep.mubr.msk.bf16.mxu1 %vm263_vm1, %v257_v14 }
  0xa4   : > { %v258_v15 = vpop.trf.xlu0 }
  0xa5   : > { %667 = vmatmul.mubr.msk.bf16.gmra.mrb[4].mxu1 %vm263_vm1, %v258_v15 }
  0xa8   : > { %v259_v16 = vpop.trf.xlu0 }
  0xa9   : > { %670 = vmatprep.mubr.msk.bf16.mxu1 %vm263_vm1, %v259_v16 }
  0xac   : > { %v260_v17 = vpop.trf.xlu0 }
  0xad   : > { %671 = vmatmul.mubr.msk.bf16.gmra.mrb[8].mxu1 %vm263_vm1, %v260_v17 }
  0xb0   : > { %v261_v18 = vpop.trf.xlu0 }
  0xb1   : > { %674 = vmatprep.mubr.msk.bf16.mxu1 %vm263_vm1, %v261_v18 }
  0xb4   : > { %v262_v19 = vpop.trf.xlu0 }
  0xb5   : > { %675 = vmatmul.mubr.msk.bf16.gmra.mrb[12].mxu1 %vm263_vm1, %v262_v19 }
 0x150   : > { %v648_v21 = vpop.f32.mrb[0].mxu0 }
 0x151   : > { %v359_v22 = vadd.f32 %v648_v21, %v798_v20  ;;  %v350_v23 = vpop.f32.mrb[1].mxu0 }
 0x152   : > { %v351_v24 = vadd.f32 %v798_v20, %v350_v23  ;;  %v649_v25 = vpop.f32.mrb[2].mxu0 }
 0x153   : > { %479 = vst [vmem:[%s803_s27 + $0x10] sm:$0xff] %v359_v22  ;;  %v362_v26 = vadd.f32 %v649_v25, %v798_v20  ;;  %v353_v27 = vpop.f32.mrb[3].mxu0 }
 0x154   : > { %477 = vst [vmem:[%s803_s27] sm:$0xff] %v351_v24  ;;  %v354_v28 = vadd.f32 %v798_v20, %v353_v27 }
 0x155   : > { %480 = vst [vmem:[%s803_s27 + $0x18] sm:$0xff] %v362_v26 }
 0x156   : > { %478 = vst [vmem:[%s803_s27 + $0x8] sm:$0xff] %v354_v28 }
 0x158   : > { %v652_v29 = vpop.f32.mrb[4].mxu0 }
 0x159   : > { %v375_v30 = vadd.f32 %v652_v29, %v798_v20  ;;  %v366_v31 = vpop.f32.mrb[5].mxu0 }
 0x15a   : > { %v367_v32 = vadd.f32 %v798_v20, %v366_v31  ;;  %v653_v33 = vpop.f32.mrb[6].mxu0 }
 0x15b   : > { %483 = vst [vmem:[%s803_s27 + $0x30] sm:$0xff] %v375_v30  ;;  %v378_v34 = vadd.f32 %v653_v33, %v798_v20  ;;  %v369_v35 = vpop.f32.mrb[7].mxu0 }
 0x15c   : > { %481 = vst [vmem:[%s803_s27 + $0x20] sm:$0xff] %v367_v32  ;;  %v370_v36 = vadd.f32 %v798_v20, %v369_v35 }
 0x15d   : > { %484 = vst [vmem:[%s803_s27 + $0x38] sm:$0xff] %v378_v34 }
 0x15e   : > { %482 = vst [vmem:[%s803_s27 + $0x28] sm:$0xff] %v370_v36 }
 0x160   : > { %v656_v37 = vpop.f32.mrb[8].mxu0 }
 0x161   : > { %v391_v38 = vadd.f32 %v656_v37, %v798_v20  ;;  %v382_v39 = vpop.f32.mrb[9].mxu0 }
 0x162   : > { %v383_v40 = vadd.f32 %v798_v20, %v382_v39  ;;  %v657_v41 = vpop.f32.mrb[10].mxu0 }
 0x163   : > { %487 = vst [vmem:[%s803_s27 + $0x50] sm:$0xff] %v391_v38  ;;  %v394_v42 = vadd.f32 %v657_v41, %v798_v20  ;;  %v385_v43 = vpop.f32.mrb[11].mxu0 }
 0x164   : > { %485 = vst [vmem:[%s803_s27 + $0x40] sm:$0xff] %v383_v40  ;;  %v386_v44 = vadd.f32 %v798_v20, %v385_v43 }
 0x165   : > { %488 = vst [vmem:[%s803_s27 + $0x58] sm:$0xff] %v394_v42 }
 0x166   : > { %486 = vst [vmem:[%s803_s27 + $0x48] sm:$0xff] %v386_v44 }
 0x168   : > { %v660_v45 = vpop.f32.mrb[12].mxu0 }
 0x169   : > { %v407_v46 = vadd.f32 %v660_v45, %v798_v20  ;;  %v398_v47 = vpop.f32.mrb[13].mxu0 }
 0x16a   : > { %v399_v48 = vadd.f32 %v798_v20, %v398_v47  ;;  %v661_v49 = vpop.f32.mrb[14].mxu0 }
 0x16b   : > { %491 = vst [vmem:[%s803_s27 + $0x70] sm:$0xff] %v407_v46  ;;  %v410_v50 = vadd.f32 %v661_v49, %v798_v20  ;;  %v401_v51 = vpop.f32.mrb[15].mxu0 }
 0x16c   : > { %489 = vst [vmem:[%s803_s27 + $0x60] sm:$0xff] %v399_v48  ;;  %v402_v52 = vadd.f32 %v798_v20, %v401_v51 }
 0x16d   : > { %492 = vst [vmem:[%s803_s27 + $0x78] sm:$0xff] %v410_v50 }
 0x16e   : > { %490 = vst [vmem:[%s803_s27 + $0x68] sm:$0xff] %v402_v52 }
 0x170   : > { %v664_v53 = vpop.f32.mrb[0].mxu1 }
 0x171   : > { %v423_v54 = vadd.f32 %v664_v53, %v798_v20  ;;  %v414_v55 = vpop.f32.mrb[1].mxu1 }
 0x172   : > { %v415_v56 = vadd.f32 %v798_v20, %v414_v55  ;;  %v665_v57 = vpop.f32.mrb[2].mxu1 }
 0x173   : > { %495 = vst [vmem:[%s803_s27 + $0x90] sm:$0xff] %v423_v54  ;;  %v426_v58 = vadd.f32 %v665_v57, %v798_v20  ;;  %v417_v59 = vpop.f32.mrb[3].mxu1 }
 0x174   : > { %493 = vst [vmem:[%s803_s27 + $0x80] sm:$0xff] %v415_v56  ;;  %v418_v60 = vadd.f32 %v798_v20, %v417_v59 }
 0x175   : > { %496 = vst [vmem:[%s803_s27 + $0x98] sm:$0xff] %v426_v58 }
 0x176   : > { %494 = vst [vmem:[%s803_s27 + $0x88] sm:$0xff] %v418_v60 }
 0x178   : > { %v668_v61 = vpop.f32.mrb[4].mxu1 }
 0x179   : > { %v439_v62 = vadd.f32 %v668_v61, %v798_v20  ;;  %v430_v63 = vpop.f32.mrb[5].mxu1 }
 0x17a   : > { %v431_v0 = vadd.f32 %v798_v20, %v430_v63  ;;  %v669_v1 = vpop.f32.mrb[6].mxu1 }
 0x17b   : > { %499 = vst [vmem:[%s803_s27 + $0xb0] sm:$0xff] %v439_v62  ;;  %v442_v2 = vadd.f32 %v669_v1, %v798_v20  ;;  %v433_v3 = vpop.f32.mrb[7].mxu1 }
 0x17c   : > { %497 = vst [vmem:[%s803_s27 + $0xa0] sm:$0xff] %v431_v0  ;;  %v434_v4 = vadd.f32 %v798_v20, %v433_v3 }
 0x17d   : > { %500 = vst [vmem:[%s803_s27 + $0xb8] sm:$0xff] %v442_v2 }
 0x17e   : > { %498 = vst [vmem:[%s803_s27 + $0xa8] sm:$0xff] %v434_v4 }
 0x180   : > { %v672_v5 = vpop.f32.mrb[8].mxu1 }
 0x181   : > { %v455_v6 = vadd.f32 %v672_v5, %v798_v20  ;;  %v446_v7 = vpop.f32.mrb[9].mxu1 }
 0x182   : > { %v447_v8 = vadd.f32 %v798_v20, %v446_v7  ;;  %v673_v9 = vpop.f32.mrb[10].mxu1 }
 0x183   : > { %503 = vst [vmem:[%s803_s27 + $0xd0] sm:$0xff] %v455_v6  ;;  %v458_v10 = vadd.f32 %v673_v9, %v798_v20  ;;  %v449_v11 = vpop.f32.mrb[11].mxu1 }
 0x184   : > { %501 = vst [vmem:[%s803_s27 + $0xc0] sm:$0xff] %v447_v8  ;;  %v450_v12 = vadd.f32 %v798_v20, %v449_v11 }
 0x185   : > { %504 = vst [vmem:[%s803_s27 + $0xd8] sm:$0xff] %v458_v10 }
 0x186   : > { %502 = vst [vmem:[%s803_s27 + $0xc8] sm:$0xff] %v450_v12 }
 0x188   : > { %v676_v13 = vpop.f32.mrb[12].mxu1 }
 0x189   : > { %v471_v14 = vadd.f32 %v676_v13, %v798_v20  ;;  %v462_v15 = vpop.f32.mrb[13].mxu1 }
 0x18a   : > { %v463_v16 = vadd.f32 %v798_v20, %v462_v15  ;;  %v677_v17 = vpop.f32.mrb[14].mxu1 }
 0x18b   : > { %507 = vst [vmem:[%s803_s27 + $0xf0] sm:$0xff] %v471_v14  ;;  %v474_v18 = vadd.f32 %v677_v17, %v798_v20  ;;  %v465_v19 = vpop.f32.mrb[15].mxu1 }
 0x18c   : > { %505 = vst [vmem:[%s803_s27 + $0xe0] sm:$0xff] %v463_v16  ;;  %v466_v21 = vadd.f32 %v798_v20, %v465_v19 }
 0x18d   : > { %508 = vst [vmem:[%s803_s27 + $0xf8] sm:$0xff] %v474_v18 }
 0x18e   : > { %506 = vst [vmem:[%s803_s27 + $0xe8] sm:$0xff] %v466_v21 }
 0x18f PF: > { %s13_s14 = sadd.s32 1, %s729_s14   ;;  %s882_s12 = smov %s725_s13 }
 0x190   : > { %p10_p5 = scmp.ge.s32.totalorder %s13_s14, 4   ;;  %s883_s13 = smov %s885_s15 }
 0x192   :  { %12 = sbr.rel (!%p10_p5) target bundleno = 2 (0x2), region = 62 }

</bundles_post_ra>
